<compile_context>
chip_gen: v7x
topology: tpu7x:2x2x1
jax: 0.10.0
libtpu: 0.0.40
codegen_flags: <defaults>
</compile_context>

<pallas_src>
import functools

import jax
import jax.numpy as jnp
from jax.experimental import pallas as pl
from jax.experimental.pallas import tpu as pltpu


def _softmax_axis1(x):
    # Softmax over axis 1 of an f32 (Bb, N, M) block == torch softmax(dim=1)
    # of the full (B, N, M) tensor. Denominator reciprocal goes to the EUP.
    m = jnp.max(x, axis=1, keepdims=True)
    e = jnp.exp(x - m)
    denom = jnp.sum(e, axis=1, keepdims=True)
    return e * pl.reciprocal(denom, approx=True)


def gb_kernel(q_ref, k_ref, v_ref, o_ref, *, dk):
    # Blocks: q (Bb, N, D), k (Bb, D, N), v (Bb, N, D); Bb batches per step.
    q = q_ref[...] * dk          # fold dk into q (N*D mults, native dtype)
    k = k_ref[...]
    v = v_ref[...]

    # attn = (q*dk) @ k -> (Bb, N, N); native-dtype MXU inputs, f32 accumulate.
    attn = jnp.einsum(
        "bnd,bdm->bnm", q, k, preferred_element_type=jnp.float32
    )
    attn = _softmax_axis1(attn)

    # x = attn @ v -> (Bb, N, D); probs cast to v's dtype for the MXU.
    x = jnp.einsum(
        "bnm,bmd->bnd", attn.astype(v.dtype), v,
        preferred_element_type=jnp.float32,
    )
    x = _softmax_axis1(x)

    # out = x*v + v == (x + 1) * v   (one fewer VPU op)
    out = (x + 1.0) * v.astype(jnp.float32)
    o_ref[...] = out.astype(o_ref.dtype)


def gb_forward(q, k, v, num_heads=8, batch_block=None):
    B, N, D = q.shape
    assert k.shape == (B, D, N)
    assert v.shape == (B, N, D)
    dk = float(num_heads) ** (-0.5)

    # Small problems: do everything in a single grid step. Larger B can be
    # split into batch blocks (still whole-N per step).
    if batch_block is None:
        batch_block = B
    assert B % batch_block == 0
    bb = batch_block

    kernel = functools.partial(gb_kernel, dk=dk)

    return pl.pallas_call(
        kernel,
        out_shape=jax.ShapeDtypeStruct((B, N, D), q.dtype),
        grid_spec=pltpu.PrefetchScalarGridSpec(
            num_scalar_prefetch=0,
            grid=(B // bb,),
            in_specs=[
                pl.BlockSpec((bb, N, D), lambda b: (b, 0, 0)),
                pl.BlockSpec((bb, D, N), lambda b: (b, 0, 0)),
                pl.BlockSpec((bb, N, D), lambda b: (b, 0, 0)),
            ],
            out_specs=pl.BlockSpec((bb, N, D), lambda b: (b, 0, 0)),
        ),
        compiler_params=pltpu.CompilerParams(
            dimension_semantics=("parallel",),
            vmem_limit_bytes=32 * 1024 * 1024,
        ),
    )(q, k, v)


def gb_reference(q, k, v, num_heads=8):
    # Pure-JAX reference mirroring torch ops (softmax over dim=1).
    dk = float(num_heads) ** (-0.5)
    attn = jnp.matmul(q, k) * dk
    attn = jax.nn.softmax(attn, axis=1)
    x = jnp.matmul(attn, v)
    x = jax.nn.softmax(x, axis=1)
    x = x * v
    return x + v


if __name__ == "__main__":
    key = jax.random.PRNGKey(0)
    kq, kk, kv = jax.random.split(key, 3)

    B, N, D = 2, 16, 32
    q = jax.random.normal(kq, (B, N, D), dtype=jnp.float32)
    k = jax.random.normal(kk, (B, D, N), dtype=jnp.float32)
    v = jax.random.normal(kv, (B, N, D), dtype=jnp.float32)

    out = gb_forward(q, k, v, num_heads=8)
    out = jax.block_until_ready(out)

    ref = gb_reference(q, k, v, num_heads=8)
    assert out.shape == (B, N, D)
    # Tolerance loosened vs. 1e-4: softmax denominator now uses the approximate
    # EUP reciprocal (pl.reciprocal(approx=True)).
    assert jnp.allclose(out, ref, atol=2e-3, rtol=2e-3), (
        "Pallas kernel mismatch vs reference"
    )

    print("KERNEL_OK")
</pallas_src>

<mosaic_0001>
module attributes {stable_mosaic.version = 11 : i64} {
  func.func @gb_kernel(%arg0: i32, %arg1: memref<2x16x32xf32, #tpu.memory_space<vmem>>, %arg2: memref<2x32x16xf32, #tpu.memory_space<vmem>>, %arg3: memref<2x16x32xf32, #tpu.memory_space<vmem>>, %arg4: memref<2x16x32xf32, #tpu.memory_space<vmem>>) attributes {dimension_semantics = [#tpu.dimension_semantics<parallel>], iteration_bounds = array<i64: 1>, scalar_prefetch = 0 : i64, scratch_operands = 0 : i64, tpu.core_type = #tpu.core_type<tc>, window_params = [{transform_indices = @transform_0, window_bounds = array<i64: 2, 16, 32>}, {transform_indices = @transform_1, window_bounds = array<i64: 2, 32, 16>}, {transform_indices = @transform_2, window_bounds = array<i64: 2, 16, 32>}, {transform_indices = @transform_3, window_bounds = array<i64: 2, 16, 32>}]} {
    %c0 = arith.constant 0 : index
    %c0_0 = arith.constant 0 : index
    %c0_1 = arith.constant 0 : index
    %0 = vector.load %arg1[%c0, %c0_0, %c0_1] : memref<2x16x32xf32, #tpu.memory_space<vmem>>, vector<2x16x32xf32>
    %cst = arith.constant 0.353553385 : f32
    %1 = vector.broadcast %cst : f32 to vector<2x16x32xf32>
    %2 = arith.mulf %0, %1 : vector<2x16x32xf32>
    %c0_2 = arith.constant 0 : index
    %c0_3 = arith.constant 0 : index
    %c0_4 = arith.constant 0 : index
    %3 = vector.load %arg2[%c0_2, %c0_3, %c0_4] : memref<2x32x16xf32, #tpu.memory_space<vmem>>, vector<2x32x16xf32>
    %c0_5 = arith.constant 0 : index
    %c0_6 = arith.constant 0 : index
    %c0_7 = arith.constant 0 : index
    %4 = vector.load %arg3[%c0_5, %c0_6, %c0_7] : memref<2x16x32xf32, #tpu.memory_space<vmem>>, vector<2x16x32xf32>
    "tpu.trace_start"() <{level = 10 : i32, message = "bnd,bdm->bnm"}> : () -> ()
    %cst_8 = arith.constant dense<0.000000e+00> : vector<2x16x16xf32>
    %5 = tpu.matmul %2, %3, %cst_8 {dimension_numbers = #tpu.dot_dimension_numbers<[2], [1], [1], [2], [0, 0, 0, 1, 1, 2], [0], [0]>} : vector<2x16x32xf32>, vector<2x32x16xf32>, vector<2x16x16xf32> -> vector<2x16x16xf32>
    "tpu.trace_stop"() : () -> ()
    %cst_9 = arith.constant dense<0xFF800000> : vector<2x16xf32>
    %6 = vector.multi_reduction <maximumf>, %5, %cst_9 [1] : vector<2x16x16xf32> to vector<2x16xf32>
    %7 = vector.shape_cast %6 : vector<2x16xf32> to vector<2x1x16xf32>
    %8 = vector.broadcast %7 : vector<2x1x16xf32> to vector<2x16x16xf32>
    %9 = arith.subf %5, %8 : vector<2x16x16xf32>
    %10 = math.exp %9 : vector<2x16x16xf32>
    %cst_10 = arith.constant dense<0.000000e+00> : vector<2x16xf32>
    %11 = vector.multi_reduction <add>, %10, %cst_10 [1] : vector<2x16x16xf32> to vector<2x16xf32>
    %12 = vector.shape_cast %11 : vector<2x16xf32> to vector<2x1x16xf32>
    %13 = tpu.reciprocal %12 {approx = true} : vector<2x1x16xf32> -> vector<2x1x16xf32>
    %14 = vector.broadcast %13 : vector<2x1x16xf32> to vector<2x16x16xf32>
    %15 = arith.mulf %10, %14 : vector<2x16x16xf32>
    "tpu.trace_start"() <{level = 10 : i32, message = "bnm,bmd->bnd"}> : () -> ()
    %cst_11 = arith.constant dense<0.000000e+00> : vector<2x16x32xf32>
    %16 = tpu.matmul %15, %4, %cst_11 {dimension_numbers = #tpu.dot_dimension_numbers<[2], [1], [1], [2], [0, 0, 0, 1, 1, 2], [0], [0]>} : vector<2x16x16xf32>, vector<2x16x32xf32>, vector<2x16x32xf32> -> vector<2x16x32xf32>
    "tpu.trace_stop"() : () -> ()
    %cst_12 = arith.constant dense<0xFF800000> : vector<2x32xf32>
    %17 = vector.multi_reduction <maximumf>, %16, %cst_12 [1] : vector<2x16x32xf32> to vector<2x32xf32>
    %18 = vector.shape_cast %17 : vector<2x32xf32> to vector<2x1x32xf32>
    %19 = vector.broadcast %18 : vector<2x1x32xf32> to vector<2x16x32xf32>
    %20 = arith.subf %16, %19 : vector<2x16x32xf32>
    %21 = math.exp %20 : vector<2x16x32xf32>
    %cst_13 = arith.constant dense<0.000000e+00> : vector<2x32xf32>
    %22 = vector.multi_reduction <add>, %21, %cst_13 [1] : vector<2x16x32xf32> to vector<2x32xf32>
    %23 = vector.shape_cast %22 : vector<2x32xf32> to vector<2x1x32xf32>
    %24 = tpu.reciprocal %23 {approx = true} : vector<2x1x32xf32> -> vector<2x1x32xf32>
    %25 = vector.broadcast %24 : vector<2x1x32xf32> to vector<2x16x32xf32>
    %26 = arith.mulf %21, %25 : vector<2x16x32xf32>
    %cst_14 = arith.constant 1.000000e+00 : f32
    %27 = vector.broadcast %cst_14 : f32 to vector<2x16x32xf32>
    %28 = arith.addf %26, %27 : vector<2x16x32xf32>
    %29 = arith.mulf %28, %4 : vector<2x16x32xf32>
    %c0_15 = arith.constant 0 : index
    %c0_16 = arith.constant 0 : index
    %c0_17 = arith.constant 0 : index
    %30 = vector.load %arg4[%c0_15, %c0_16, %c0_17] : memref<2x16x32xf32, #tpu.memory_space<vmem>>, vector<2x16x32xf32>
    tpu.vector_store %arg4[%c0_15, %c0_16, %c0_17], %29 {strides = array<i32>} : memref<2x16x32xf32, #tpu.memory_space<vmem>>, vector<2x16x32xf32>,
    return
  }
  func.func @transform_0(%arg0: i32) -> (i32, i32, i32) {
    %c0_i32 = arith.constant 0 : i32
    %c0_i32_0 = arith.constant 0 : i32
    %c0_i32_1 = arith.constant 0 : i32
    return %arg0, %c0_i32, %c0_i32_0 : i32, i32, i32
  }
  func.func @transform_1(%arg0: i32) -> (i32, i32, i32) {
    %c0_i32 = arith.constant 0 : i32
    %c0_i32_0 = arith.constant 0 : i32
    %c0_i32_1 = arith.constant 0 : i32
    return %arg0, %c0_i32, %c0_i32_0 : i32, i32, i32
  }
  func.func @transform_2(%arg0: i32) -> (i32, i32, i32) {
    %c0_i32 = arith.constant 0 : i32
    %c0_i32_0 = arith.constant 0 : i32
    %c0_i32_1 = arith.constant 0 : i32
    return %arg0, %c0_i32, %c0_i32_0 : i32, i32, i32
  }
  func.func @transform_3(%arg0: i32) -> (i32, i32, i32) {
    %c0_i32 = arith.constant 0 : i32
    %c0_i32_0 = arith.constant 0 : i32
    %c0_i32_1 = arith.constant 0 : i32
    return %arg0, %c0_i32, %c0_i32_0 : i32, i32, i32
  }
}

</mosaic_0001>

<bundles_post_ra>
// kernel: tpu_custom_call.1
= control target key start
LH: loop header
LB: loop body
LE: loop exit
PB: predicated region body
PF: predicated region fallthrough
CT: control target
= control target key end

     0   :  { %vm35_vm0 = vcmask 261120   ;;  %s763_s0 = inlined_call_operand.vmem [shape: f32[2,16,32], index: 0, kind: input, shape index: {}]   ;;  %s764_s1 = inlined_call_operand.vmem [shape: f32[2,32,16], index: 1, kind: input, shape index: {}]   ;;  %s765_s2 = inlined_call_operand.vmem [shape: f32[2,16,32], index: 2, kind: input, shape index: {}]   ;;  %s766_s3 = inlined_call_operand.hbm [shape: f32[2,16,32], index: 3, kind: output, shape index: {}]  }
   0x1   :  { %v23_v0 = vld [vmem:[%s764_s1] sm:$0xff]  ;;  %v24_v1 = vld [vmem:[%s764_s1 + $0x8] sm:$0xff]  ;;  %v25_v5 = vld [vmem:[%s764_s1 + $0x10] sm:$0xff] }
   0x2   :  { %v27_v2 = vld [vmem:[%s764_s1 + $0x20] sm:$0xff]  ;;  %v561_v3 = vpack.c.bf16 %v24_v1, %v23_v0  ;;  %v28_v4 = vld [vmem:[%s764_s1 + $0x28] sm:$0xff]  ;;  %v26_v6 = vld [vmem:[%s764_s1 + $0x18] sm:$0xff] }
   0x3   :  { %v569_v7 = vpack.c.bf16 %v28_v4, %v27_v2  ;;  %v565_v8 = vpack.c.bf16 %v26_v6, %v25_v5  ;;  %v29_v9 = vld [vmem:[%s764_s1 + $0x30] sm:$0xff]  ;;  %v30_v10 = vld [vmem:[%s764_s1 + $0x38] sm:$0xff]  ;;  %v15_v11 = vld [vmem:[%s763_s0] sm:$0xff] }
   0x4   :  { %562 = vmatprep.subr.bf16.mxu0 %v561_v3  ;;  %v573_v12 = vpack.c.bf16 %v30_v10, %v29_v9  ;;  %v19_v13 = vmul.f32 0.35355338, %v15_v11  ;;  %v17_v14 = vld [vmem:[%s763_s0 + $0x10] sm:$0xff]  ;;  %v16_v16 = vld [vmem:[%s763_s0 + $0x8] sm:$0xff]  ;;  %v18_v17 = vld [vmem:[%s763_s0 + $0x18] sm:$0xff] }
   0x5   :  { %570 = vmatprep.subr.bf16.mxu1 %v569_v7  ;;  %564 = vmatpush3.bf16.msra.mxu0 %v561_v3  ;;  %v21_v15 = vmul.f32 0.35355338, %v17_v14 }
   0x6   :  { %572 = vmatpush3.bf16.msra.mxu1 %v569_v7  ;;  %566 = vmatprep.subr.bf16.mxu0 %v565_v8 }
   0x7   :  { %8 = vsyncpa [#allocation3], 0  ;;  %574 = vmatprep.subr.bf16.mxu1 %v573_v12  ;;  %533 = vmatprep.mubr.msk.f32.mxu0 %vm35_vm0, %v19_v13  ;;  %v20_v18 = vmul.f32 0.35355338, %v16_v16  ;;  %v22_v19 = vmul.f32 0.35355338, %v18_v17 }
   0x8   :  { %544 = vmatprep.mubr.msk.f32.mxu1 %vm35_vm0, %v21_v15  ;;  %v702_v20 = vld [vmem:[%s765_s2] sm:$0xff]  ;;  %v707_v21 = vld [vmem:[%s765_s2 + $0x8] sm:$0xff]  ;;  %v712_v22 = vld [vmem:[%s765_s2 + $0x10] sm:$0xff]  ;;  %vm198_vm1 = vcmask 130048  }
   0x9   :  { %568 = vmatpush3.bf16.msra.mxu0 %v565_v8  ;;  %v577_v23 = vpack.c.bf16 %v707_v21, %v702_v20  ;;  %v719_v24 = vld [vmem:[%s765_s2 + $0x18] sm:$0xff]  ;;  %s636_s2 = smov [#allocation2]  }
   0xa   :  { %576 = vmatpush3.bf16.msra.mxu1 %v573_v12  ;;  %v581_v25 = vpack.c.bf16 %v719_v24, %v712_v22  ;;  %s486_s15 = sshll.u32 %s636_s2, 4  ;;  %s487_s15 = int_to_ptr.vmem [resolvable:$true] %s486_s15 }
   0xb   :  { %578 = vmatprep.subr.bf16.mxu0 %v577_v23  ;;  %s612_s16 = scalar_lea.vmem %s487_s15, 512  ;;  %p617_p1 = scmp.lt.s32.totalorder %s487_s15, %s487_s15 }
   0xc   :  { %534 = vmatmul.mubr.msk.f32.vlgmr.msra.gmra.mrb[0].mxu0 %vm35_vm0, %v20_v18  ;;  %582 = vmatprep.subr.bf16.mxu1 %v581_v25  ;;  %p613_p0 = scmp.ne.s32.totalorder %s487_s15, %s612_s16  ;;  %p618_p2 = scmp.lt.s32.totalorder %s612_s16, %s612_s16 }
   0xd   :  { %545 = vmatmul.mubr.msk.f32.vlgmr.msra.gmra.mrb[0].mxu1 %vm35_vm0, %v22_v19  ;;  %580 = vmatpush3.bf16.msra.mxu0 %v577_v23 }
   0xe   :  { %584 = vmatpush3.bf16.msra.mxu1 %v581_v25  ;;  %p619_p3 = por %p618_p2, %p617_p1 }
  0x10   :  { %p620_p4 = pnand %p619_p3, %p613_p0 }
  0xdf   :  { %v535_v26 = vpop.f32.mrb[0].mxu0 }
  0xe0   :  { %v200_v27 = vsel %vm198_vm1, %v535_v26, -inf  ;;  %v546_v28 = vpop.f32.mrb[0].mxu1  ;;  %v108_v29 = vpop.f32.mrb[1].mxu0 }
  0xe1   :  { %v209_v30 = vsel %vm198_vm1, %v546_v28, -inf  ;;  %v199_v31 = vsel %vm198_vm1, %v108_v29, -inf  ;;  %v189_v32 = vpop.f32.mrb[1].mxu1 }
  0xe2   :  { %v201_v33 = vmax.f32 %v199_v31, %v200_v27  ;;  %v208_v34 = vsel %vm198_vm1, %v189_v32, -inf }
  0xe3   :  { %v210_v35 = vmax.f32 %v208_v34, %v209_v30 }
  0xe4   :  { %v202_v36 = vrot.slane %v201_v33, 4 }
  0xe5   :  { %v211_v37 = vrot.slane %v210_v35, 4 }
  0xe6   :  { %v203_v38 = vmax.f32 %v201_v33, %v202_v36 }
  0xe7   :  { %v212_v39 = vmax.f32 %v210_v35, %v211_v37 }
  0xe8   :  { %v204_v40 = vrot.slane %v203_v38, 2 }
  0xe9   :  { %v213_v41 = vrot.slane %v212_v39, 2 }
  0xea   :  { %v205_v42 = vmax.f32 %v203_v38, %v204_v40 }
  0xeb   :  { %v214_v43 = vmax.f32 %v212_v39, %v213_v41 }
  0xec   :  { %v206_v44 = vrot.slane %v205_v42, 1 }
  0xed   :  { %v215_v45 = vrot.slane %v214_v43, 1 }
  0xee   :  { %v207_v46 = vmax.f32 %v205_v42, %v206_v44 }
  0xef   :  { %v216_v47 = vmax.f32 %v214_v43, %v215_v45 }
  0xf0   :  { %v217_v48 = vsub.f32 %v108_v29, %v207_v46  ;;  %v218_v49 = vsub.f32 %v535_v26, %v207_v46 }
  0xf1   :  { %v219_v50 = vsub.f32 %v189_v32, %v216_v47  ;;  %v220_v51 = vsub.f32 %v546_v28, %v216_v47 }
  0xf2   :  { %v221_v52 = vmul.f32 1.442695, %v217_v48  ;;  %v223_v53 = vmul.f32 1.442695, %v218_v49 }
  0xf3   :  { %v225_v54 = vmul.f32 1.442695, %v219_v50  ;;  %v227_v55 = vmul.f32 1.442695, %v220_v51 }
  0xf4   :  { %588 = vpow2.f32 %v221_v52 }
  0xf5   :  { %590 = vpow2.f32 %v223_v53 }
  0xf6   :  { %592 = vpow2.f32 %v225_v54 }
  0xf7   :  { %594 = vpow2.f32 %v227_v55 }
  0xfe   :  { %v589_v56 = vpop.eup %588 }
  0xff   :  { %v591_v57 = vpop.eup %590  ;;  %v229_v58 = vsel %vm198_vm1, %v589_v56, 0.0 }
 0x100   :  { %v593_v59 = vpop.eup %592  ;;  %v230_v60 = vsel %vm198_vm1, %v591_v57, 0.0 }
 0x101   :  { %v595_v61 = vpop.eup %594  ;;  %v231_v62 = vadd.f32 %v230_v60, %v229_v58  ;;  %v238_v63 = vsel %vm198_vm1, %v593_v59, 0.0 }
 0x102   :  { %v239_v0 = vsel %vm198_vm1, %v595_v61, 0.0 }
 0x103   :  { %v232_v1 = vrot.slane %v231_v62, 4  ;;  %v240_v2 = vadd.f32 %v239_v0, %v238_v63 }
 0x105   :  { %v233_v3 = vadd.f32 %v232_v1, %v231_v62  ;;  %v241_v4 = vrot.slane %v240_v2, 4 }
 0x107   :  { %v234_v5 = vrot.slane %v233_v3, 2  ;;  %v242_v6 = vadd.f32 %v241_v4, %v240_v2 }
 0x109   :  { %v235_v7 = vadd.f32 %v234_v5, %v233_v3  ;;  %v243_v8 = vrot.slane %v242_v6, 2 }
 0x10b   :  { %v236_v9 = vrot.slane %v235_v7, 1  ;;  %v244_v10 = vadd.f32 %v243_v8, %v242_v6 }
 0x10d   :  { %v245_v11 = vrot.slane %v244_v10, 1  ;;  %v237_v12 = vadd.f32 %v236_v9, %v235_v7 }
 0x10f   :  { %596 = vrcp.f32 %v237_v12  ;;  %v246_v13 = vadd.f32 %v245_v11, %v244_v10 }
 0x111   :  { %598 = vrcp.f32 %v246_v13 }
 0x119   :  { %v597_v14 = vpop.eup %596 }
 0x11a   :  { %v249_v15 = vmul.f32 %v597_v14, %v589_v56  ;;  %v250_v16 = vmul.f32 %v597_v14, %v591_v57 }
 0x11b   :  { %v599_v17 = vpop.eup %598 }
 0x11c   :  { %551 = vmatprep.mubr.msk.f32.mxu0 %vm198_vm1, %v249_v15  ;;  %v251_v18 = vmul.f32 %v599_v17, %v593_v59  ;;  %v252_v19 = vmul.f32 %v599_v17, %v595_v61 }
 0x11d   :  { %552 = vmatmul.mubr.msk.f32.vlgmr.msra.gmra.mrb[2].mxu0 %vm198_vm1, %v250_v16 }
 0x11e   :  { %558 = vmatprep.mubr.msk.f32.mxu1 %vm198_vm1, %v251_v18 }
 0x11f   :  { %559 = vmatmul.mubr.msk.f32.vlgmr.msra.gmra.mrb[2].mxu1 %vm198_vm1, %v252_v19 }
 0x1f0   :  { %v553_v23 = vpop.f32.mrb[2].mxu0 }
 0x1f1   :  { %v416_v25 = vsel %vm35_vm0, %v553_v23, -inf  ;;  %v325_v26 = vpop.f32.mrb[3].mxu0 }
 0x1f2   :  { %v560_v27 = vpop.f32.mrb[2].mxu1  ;;  %v415_v28 = vsel %vm35_vm0, %v325_v26, -inf }
 0x1f3   :  { %v425_v29 = vsel %vm35_vm0, %v560_v27, -inf  ;;  %v417_v30 = vmax.f32 %v415_v28, %v416_v25  ;;  %v406_v31 = vpop.f32.mrb[3].mxu1 }
 0x1f4   :  { %v424_v32 = vsel %vm35_vm0, %v406_v31, -inf }
 0x1f5   :  { %v418_v33 = vrot.slane %v417_v30, 4  ;;  %v426_v34 = vmax.f32 %v424_v32, %v425_v29 }
 0x1f7   :  { %v419_v35 = vmax.f32 %v417_v30, %v418_v33  ;;  %v427_v36 = vrot.slane %v426_v34, 4 }
 0x1f9   :  { %v420_v37 = vrot.slane %v419_v35, 2  ;;  %v428_v38 = vmax.f32 %v426_v34, %v427_v36 }
 0x1fb   :  { %v421_v39 = vmax.f32 %v419_v35, %v420_v37  ;;  %v429_v40 = vrot.slane %v428_v38, 2 }
 0x1fd   :  { %v422_v41 = vrot.slane %v421_v39, 1  ;;  %v430_v42 = vmax.f32 %v428_v38, %v429_v40 }
 0x1ff   :  { %v423_v43 = vmax.f32 %v421_v39, %v422_v41  ;;  %v431_v44 = vrot.slane %v430_v42, 1 }
 0x201   :  { %v433_v45 = vsub.f32 %v325_v26, %v423_v43  ;;  %v434_v46 = vsub.f32 %v553_v23, %v423_v43  ;;  %v432_v47 = vmax.f32 %v430_v42, %v431_v44 }
 0x203   :  { %v437_v48 = vmul.f32 1.442695, %v433_v45  ;;  %v439_v49 = vmul.f32 1.442695, %v434_v46  ;;  %v435_v50 = vsub.f32 %v406_v31, %v432_v47  ;;  %v436_v51 = vsub.f32 %v560_v27, %v432_v47 }
 0x205   :  { %600 = vpow2.f32 %v437_v48  ;;  %v441_v52 = vmul.f32 1.442695, %v435_v50  ;;  %v443_v53 = vmul.f32 1.442695, %v436_v51 }
 0x206   :  { %602 = vpow2.f32 %v439_v49 }
 0x207   :  { %604 = vpow2.f32 %v441_v52 }
 0x208   :  { %606 = vpow2.f32 %v443_v53 }
 0x20f   :  { %v601_v54 = vpop.eup %600 }
 0x210   :  { %v603_v55 = vpop.eup %602  ;;  %v445_v56 = vsel %vm35_vm0, %v601_v54, 0.0 }
 0x211   :  { %v605_v57 = vpop.eup %604  ;;  %v446_v58 = vsel %vm35_vm0, %v603_v55, 0.0 }
 0x212   :  { %v607_v59 = vpop.eup %606  ;;  %v447_v60 = vadd.f32 %v446_v58, %v445_v56  ;;  %v454_v61 = vsel %vm35_vm0, %v605_v57, 0.0 }
 0x213   :  { %v455_v62 = vsel %vm35_vm0, %v607_v59, 0.0 }
 0x214   :  { %v448_v63 = vrot.slane %v447_v60, 4  ;;  %v456_v0 = vadd.f32 %v455_v62, %v454_v61 }
 0x216   :  { %v449_v1 = vadd.f32 %v448_v63, %v447_v60  ;;  %v457_v2 = vrot.slane %v456_v0, 4 }
 0x218   :  { %v450_v3 = vrot.slane %v449_v1, 2  ;;  %v458_v4 = vadd.f32 %v457_v2, %v456_v0 }
 0x21a   :  { %v451_v5 = vadd.f32 %v450_v3, %v449_v1  ;;  %v459_v6 = vrot.slane %v458_v4, 2 }
 0x21c   :  { %v452_v7 = vrot.slane %v451_v5, 1  ;;  %v460_v8 = vadd.f32 %v459_v6, %v458_v4 }
 0x21e   :  { %v453_v9 = vadd.f32 %v452_v7, %v451_v5  ;;  %v461_v10 = vrot.slane %v460_v8, 1 }
 0x220   :  { %608 = vrcp.f32 %v453_v9  ;;  %v462_v11 = vadd.f32 %v461_v10, %v460_v8 }
 0x222   :  { %610 = vrcp.f32 %v462_v11 }
 0x22a   :  { %v609_v12 = vpop.eup %608 }
 0x22b   :  { %v465_v13 = vmul.f32 %v609_v12, %v601_v54  ;;  %v466_v14 = vmul.f32 %v609_v12, %v603_v55 }
 0x22c   :  { %v611_v15 = vpop.eup %610 }
 0x22d   :  { %v469_v16 = vadd.f32 1.0, %v465_v13  ;;  %v470_v17 = vadd.f32 1.0, %v466_v14  ;;  %v467_v18 = vmul.f32 %v611_v15, %v605_v57  ;;  %v468_v19 = vmul.f32 %v611_v15, %v607_v59 }
 0x22f   :  { %v473_v23 = vmul.f32 %v469_v16, %v702_v20  ;;  %v471_v25 = vadd.f32 1.0, %v467_v18  ;;  %v472_v26 = vadd.f32 1.0, %v468_v19  ;;  %v474_v27 = vmul.f32 %v470_v17, %v707_v21 }
 0x231   :  { %477 = vst.msk [vmem:[#allocation2] sm:$0xff] %vm35_vm0, %v473_v23  ;;  %v475_v28 = vmul.f32 %v471_v25, %v712_v22  ;;  %v476_v29 = vmul.f32 %v472_v26, %v719_v24  ;;  %478 = vst.msk [vmem:[#allocation2 + $0x8] sm:$0xff] %vm35_vm0, %v474_v27 }
 0x233   :  { %479 = vst.msk [vmem:[#allocation2 + $0x10] sm:$0xff] %vm35_vm0, %v475_v28  ;;  %480 = vst.msk [vmem:[#allocation2 + $0x18] sm:$0xff] %vm35_vm0, %v476_v29 }
 0x234   :  { %623 = shalt.err (!%p620_p4)
}
 0x235   :  { %s624_s19 = scalar_lea.hbm %s766_s3, 512 }
 0x236   :  { %p625_p5 = scmp.ne.s32.totalorder %s766_s3, %s624_s19  ;;  %p628_p6 = scmp.lt.u32.totalorder %s624_s19, %s766_s3 }
 0x238   :  { %p630_p7 = pnand %p628_p6, %p625_p5 }
 0x23a   :  { %633 = shalt.err (!%p630_p7)
}
 0x23b   :  { %s637_s24 = smov 128   ;;  %s638_s25 = smov 8  }
 0x23c   :  { %492 = dma.vmem_to_hbm [thread:$0]  %s487_s15, 512, %s766_s3, [#allocation3], %s637_s24, %s637_s24, %s638_s25  }
 0x23d   :  { %634 = dma.done.wait [#allocation3], 512  }
 0x23e   :  { %635 = vsyncadd [#allocation3], 4294966784 }
 0x23f   :  { %496 = vsyncpa [#allocation3], 1 }

</bundles_post_ra>
